<compile_context>
chip_gen: v7x
topology: tpu7x:2x2x1
jax: 0.10.0
libtpu: 0.0.40
codegen_flags: <defaults>
</compile_context>

<pallas_src>
import functools

import jax
import jax.numpy as jnp
from jax import lax
from jax.experimental import pallas as pl
from jax.experimental.pallas import tpu as pltpu


# ----------------------------- Pallas kernel ------------------------------- #

def _pe_dropout_kernel(seed_ref, x_ref, pe_ref, o_ref, *,
                       rate, training, tile_rows, row_len):
    # seed_ref : SMEM scalar-prefetch, shape (1,) int32
    # x_ref    : (tile_rows, row_len)   flattened (batch-rows, S*D) tile
    # pe_ref   : (1, row_len)           VMEM-resident PE row (constant index_map)
    # o_ref    : (tile_rows, row_len)
    y = x_ref[...] + pe_ref[...]                       # (1, L) broadcasts over rows

    if training and rate > 0.0:
        # Portable counter-based PRNG (lowbias32 hash): unique stream per element,
        # seeded by the prefetched scalar. Pure int32/uint32 VPU ops -> lowers on
        # TPU and on the CPU interpret path (unlike pltpu.prng_seed).
        rows = lax.broadcasted_iota(jnp.uint32, (tile_rows, row_len), 0)
        cols = lax.broadcasted_iota(jnp.uint32, (tile_rows, row_len), 1)
        base = (pl.program_id(0) * tile_rows).astype(jnp.uint32)
        gidx = (base + rows) * jnp.uint32(row_len) + cols
        h = gidx ^ seed_ref[0].astype(jnp.uint32)
        h = (h ^ (h >> 16)) * jnp.uint32(0x7FEB352D)
        h = (h ^ (h >> 15)) * jnp.uint32(0x846CA68B)
        h = h ^ (h >> 16)
        # Drop with probability `rate`: h < rate * 2^32 (pure uint compare).
        threshold = jnp.uint32(min(int(rate * (2 ** 32)), 2 ** 32 - 1))
        inv_keep = jnp.asarray(1.0 / (1.0 - rate), dtype=y.dtype)
        y = jnp.where(h >= threshold, y * inv_keep, jnp.zeros_like(y))

    o_ref[...] = y


# ----------------------------- Helpers ------------------------------------- #

def positional_encoding_table(position: int, d_model: int) -> jnp.ndarray:
    """Matches PositionalEncoding.positional_encoding (init-time precompute)."""
    pos = jnp.arange(position, dtype=jnp.float32)[:, None]       # (P, 1)
    i = jnp.arange(d_model, dtype=jnp.float32)[None, :]          # (1, D)
    angles = pos / jnp.power(10000.0, (2.0 * jnp.floor(i / 2.0)) / d_model)
    even = (jnp.arange(d_model)[None, :] % 2) == 0
    pe = jnp.where(even, jnp.sin(angles), jnp.cos(angles))       # even: sin, odd: cos
    return pe[None, ...]                                         # (1, P, D)


def _choose_tile_rows(batch: int, bytes_per_row: int,
                      target_block_bytes: int = 4 << 20) -> int:
    """Rows per block: big tiles for DMA efficiency, capped by a conservative
    VMEM budget (~5x block bytes with double-buffered in/out + resident PE)."""
    cap = max(1, target_block_bytes // max(1, bytes_per_row))
    if cap >= batch:
        # Give v7x's 2nd TensorCore work only when splitting keeps >=8 sublane rows.
        if batch % 16 == 0 and bytes_per_row * (batch // 2) >= (1 << 20):
            return batch // 2
        return batch
    best, best8 = 1, 0
    for d in range(1, cap + 1):
        if batch % d == 0:
            best = d
            if d % 8 == 0:
                best8 = d
    return best8 if best8 else best


# ----------------------------- Module wrapper ------------------------------ #

class PositionalEncodingPallas:
    def __init__(self, position: int, d_model: int, dropout: float = 0.1):
        self.d_model = d_model
        self.rate = float(dropout)
        # Precomputed once, exactly as the PyTorch module does in __init__.
        self.pos_encoding = positional_encoding_table(position, d_model)   # (1, P, D)

    def __call__(self, inputs, *, training: bool = False, seed: int = 0):
        B, S, D = inputs.shape
        row_len = S * D                                        # lane-dense last dim
        x2 = inputs.reshape(B, row_len)
        pe_row = self.pos_encoding[0, :S, :].reshape(1, row_len).astype(inputs.dtype)

        bytes_per_row = row_len * jnp.dtype(inputs.dtype).itemsize
        tile_rows = _choose_tile_rows(B, bytes_per_row)
        grid = (B // tile_rows,)
        seed_arr = jnp.array([seed], jnp.int32)

        kernel = functools.partial(
            _pe_dropout_kernel, rate=self.rate, training=training,
            tile_rows=tile_rows, row_len=row_len)

        out2 = pl.pallas_call(
            kernel,
            out_shape=jax.ShapeDtypeStruct((B, row_len), inputs.dtype),
            grid_spec=pltpu.PrefetchScalarGridSpec(
                num_scalar_prefetch=1,                         # seed -> SMEM
                grid=grid,
                in_specs=[
                    pl.BlockSpec((tile_rows, row_len), lambda b, seed: (b, 0)),  # x
                    pl.BlockSpec((1, row_len), lambda b, seed: (0, 0)),          # PE (resident)
                ],
                out_specs=pl.BlockSpec((tile_rows, row_len), lambda b, seed: (b, 0)),
            ),
            compiler_params=pltpu.CompilerParams(
                dimension_semantics=("parallel",),             # megacore-friendly on v7x
                vmem_limit_bytes=48 << 20,                     # v5e default scoped is 16 MiB
            ),
        )(seed_arr, x2, pe_row)

        return out2.reshape(B, S, D)


# ----------------------------- Main ---------------------------------------- #

if __name__ == "__main__":
    key = jax.random.PRNGKey(0)
    batch, seq, d_model, max_position = 2, 8, 32, 16

    x = jax.random.normal(key, (batch, seq, d_model), jnp.float32)
    mod = PositionalEncodingPallas(max_position, d_model, dropout=0.1)

    # --- Eval / inference mode: dropout is identity; must match reference. ---
    out = jax.block_until_ready(mod(x, training=False))
    ref = x + mod.pos_encoding[:, :seq, :]
    assert out.shape == (batch, seq, d_model)
    assert out.dtype == x.dtype
    assert jnp.allclose(out, ref, atol=1e-6, rtol=1e-6), "eval-mode mismatch vs reference"

    # --- Training mode: every element is either dropped (0) or kept & scaled by
    #     1/(1-p), matching torch.nn.Dropout semantics (values differ from torch's
    #     RNG stream, as documented). ---
    out_t = jax.block_until_ready(mod(x, training=True, seed=1234))
    scaled = ref * jnp.float32(1.0 / (1.0 - mod.rate))
    ok = jnp.isclose(out_t, 0.0, atol=1e-6) | jnp.isclose(out_t, scaled, rtol=1e-5, atol=1e-6)
    assert out_t.shape == (batch, seq, d_model)
    assert bool(jnp.all(ok)), "training-mode dropout semantics mismatch"

    print("KERNEL_OK")
</pallas_src>

<mosaic_0001>
module attributes {stable_mosaic.version = 11 : i64} {
  func.func @_pe_dropout_kernel(%arg0: i32, %arg1: memref<1xi32, #tpu.memory_space<smem>>, %arg2: memref<2x256xf32, #tpu.memory_space<vmem>>, %arg3: memref<1x256xf32, #tpu.memory_space<vmem>>, %arg4: memref<2x256xf32, #tpu.memory_space<vmem>>) attributes {dimension_semantics = [#tpu.dimension_semantics<parallel>], iteration_bounds = array<i64: 1>, scalar_prefetch = 1 : i64, scratch_operands = 0 : i64, tpu.core_type = #tpu.core_type<tc>, window_params = [{transform_indices = @transform_0, window_bounds = array<i64: 2, 256>}, {pipeline_mode = #tpu.pipeline_mode<synchronous>, transform_indices = @transform_1, window_bounds = array<i64: 1, 256>}, {transform_indices = @transform_2, window_bounds = array<i64: 2, 256>}]} {
    %c0 = arith.constant 0 : index
    %c0_0 = arith.constant 0 : index
    %0 = vector.load %arg2[%c0, %c0_0] : memref<2x256xf32, #tpu.memory_space<vmem>>, vector<2x256xf32>
    %c0_1 = arith.constant 0 : index
    %c0_2 = arith.constant 0 : index
    %1 = vector.load %arg3[%c0_1, %c0_2] : memref<1x256xf32, #tpu.memory_space<vmem>>, vector<1x256xf32>
    %2 = vector.broadcast %1 : vector<1x256xf32> to vector<2x256xf32>
    %3 = arith.addf %0, %2 : vector<2x256xf32>
    %c0_3 = arith.constant 0 : index
    %c0_4 = arith.constant 0 : index
    %4 = vector.load %arg4[%c0_3, %c0_4] : memref<2x256xf32, #tpu.memory_space<vmem>>, vector<2x256xf32>
    tpu.vector_store %arg4[%c0_3, %c0_4], %3 {strides = array<i32>} : memref<2x256xf32, #tpu.memory_space<vmem>>, vector<2x256xf32>,
    return
  }
  func.func @transform_0(%arg0: i32, %arg1: memref<1xi32, #tpu.memory_space<smem>>) -> (i32, i32) {
    %c0_i32 = arith.constant 0 : i32
    %c0_i32_0 = arith.constant 0 : i32
    return %arg0, %c0_i32 : i32, i32
  }
  func.func @transform_1(%arg0: i32, %arg1: memref<1xi32, #tpu.memory_space<smem>>) -> (i32, i32) {
    %c0_i32 = arith.constant 0 : i32
    %c0_i32_0 = arith.constant 0 : i32
    %c0_i32_1 = arith.constant 0 : i32
    return %c0_i32, %c0_i32_0 : i32, i32
  }
  func.func @transform_2(%arg0: i32, %arg1: memref<1xi32, #tpu.memory_space<smem>>) -> (i32, i32) {
    %c0_i32 = arith.constant 0 : i32
    %c0_i32_0 = arith.constant 0 : i32
    return %arg0, %c0_i32 : i32, i32
  }
}

</mosaic_0001>

<bundles_post_ra>
// kernel: tpu_custom_call.1
= control target key start
LH: loop header
LB: loop body
LE: loop exit
PB: predicated region body
PF: predicated region fallthrough
CT: control target
= control target key end

     0   :  { %9 = vsyncpa [#allocation5], 0  ;;  %s164_s0 = inlined_call_operand.<no memory space> [shape: s32[1], index: 0, kind: input, shape index: {}]   ;;  %s165_s1 = inlined_call_operand.hbm [shape: f32[2,256], index: 1, kind: input, shape index: {}]   ;;  %s166_s2 = inlined_call_operand.vmem [shape: f32[1,256], index: 2, kind: input, shape index: {}]   ;;  %s167_s3 = inlined_call_operand.hbm [shape: f32[2,256], index: 3, kind: output, shape index: {}]  }
   0x1   :  { %10 = vsyncpa [#allocation6], 0  ;;  %s114_s12 = smov [#allocation4]   ;;  %s66_s16 = scalar_lea.hbm %s165_s1, 64 }
   0x2   :  { %s17_s13 = sshll.u32 %s114_s12, 4  ;;  %p67_p0 = scmp.ne.s32.totalorder %s165_s1, %s66_s16  ;;  %s18_s13 = int_to_ptr.vmem [resolvable:$true] %s17_s13 }
   0x3   :  { %p70_p1 = scmp.lt.u32.totalorder %s66_s16, %s165_s1 }
   0x5   :  { %p72_p2 = pnand %p70_p1, %p67_p0 }
   0x7   :  { %75 = shalt.err (!%p72_p2)
}
   0x8   :  { %s76_s20 = scalar_lea.vmem %s18_s13, 64  ;;  %p81_p4 = scmp.lt.s32.totalorder %s18_s13, %s18_s13 }
   0x9   :  { %p77_p3 = scmp.ne.s32.totalorder %s18_s13, %s76_s20  ;;  %p82_p5 = scmp.lt.s32.totalorder %s76_s20, %s76_s20 }
   0xb   :  { %p83_p6 = por %p82_p5, %p81_p4 }
   0xd   :  { %p84_p7 = pnand %p83_p6, %p77_p3 }
   0xf   :  { %87 = shalt.err (!%p84_p7)
}
  0x10   :  { %20 = dma.hbm_to_vmem [thread:$0]  %s165_s1, 64, %s18_s13, [#allocation5]  }
  0x11   :  { %110 = dma.done.wait [#allocation5], 64  }
  0x12   :  { %111 = vsyncadd [#allocation5], 4294967232  ;;  %v29_v0 = vlaneseq  ;;  %v115_v1 = vmov 1983009808   ;;  %v27_v7 = vld [vmem:[%s166_s2] sm:$0x3] }
  0x13   :  { %v39_v2 = vunpack.c.l.s4 %v115_v1  ;;  %v26_v12 = vld [vmem:[#allocation4] sm:$0xf]  ;;  %s116_s25 = smov [#allocation7]  }
  0x14   :  { %v30_v3 = vshrl.u32 %v29_v0, 7  ;;  %s54_s1 = sshll.u32 %s116_s25, 4  ;;  %s55_s1 = int_to_ptr.vmem [resolvable:$true] %s54_s1 }
  0x15   :  { %v40_v6 = vunpack.c.0.s8 %v39_v2  ;;  %s88_s26 = scalar_lea.vmem %s55_s1, 64  ;;  %p93_p9 = scmp.lt.s32.totalorder %s55_s1, %s55_s1 }
  0x16   :  { %v31_v4 = vsub.s32 0, %v30_v3  ;;  %v35_v5 = vsub.s32 1, %v30_v3  ;;  %p89_p8 = scmp.ne.s32.totalorder %s55_s1, %s88_s26  ;;  %p94_p10 = scmp.lt.s32.totalorder %s88_s26, %s88_s26 }
  0x17   :  { %v43_v10 = vsub.s32 %v40_v6, %v30_v3 }
  0x18   :  { %v32_v8 = vrot.slane %v27_v7, %v31_v4  ;;  %v36_v9 = vrot.slane %v27_v7, %v35_v5  ;;  %p95_p11 = por %p94_p10, %p93_p9 }
  0x1a   :  { %v37_v11 = vcombine.low %v32_v8, %v36_v9  ;;  %p96_p12 = pnand %p95_p11, %p89_p8 }
  0x1c   :  { %v44_v13 = vrot.slane %v37_v11, %v43_v10 }
  0x1e   :  { %v46_v14 = vadd.f32 %v44_v13, %v26_v12 }
  0x20   :  { %47 = vst [vmem:[#allocation7] sm:$0xf] %v46_v14 }
  0x21   :  { %99 = shalt.err (!%p96_p12)
}
  0x22   :  { %s100_s28 = scalar_lea.hbm %s167_s3, 64 }
  0x23   :  { %p101_p13 = scmp.ne.s32.totalorder %s167_s3, %s100_s28  ;;  %p104_p0 = scmp.lt.u32.totalorder %s100_s28, %s167_s3 }
  0x25   :  { %p106_p1 = pnand %p104_p0, %p101_p13 }
  0x27   :  { %109 = shalt.err (!%p106_p1)
}
  0x28   :  { %57 = dma.vmem_to_hbm [thread:$0]  %s55_s1, 64, %s167_s3, [#allocation6]  }
  0x29   :  { %112 = dma.done.wait [#allocation6], 64  }
  0x2a   :  { %113 = vsyncadd [#allocation6], 4294967232 }
  0x2b   :  { %61 = vsyncpa [#allocation5], 1 }
  0x2c   :  { %62 = vsyncpa [#allocation6], 1 }

</bundles_post_ra>
